<compile_context>
chip_gen: v7x
topology: tpu7x:2x2x1
jax: 0.10.0
libtpu: 0.0.40
codegen_flags: <defaults>
</compile_context>

<pallas_src>
import functools

import jax
import jax.numpy as jnp
from jax.experimental import pallas as pl
from jax.experimental.pallas import tpu as pltpu


# --------------------------------------------------------------------------- #
# Shared focal modulation
# --------------------------------------------------------------------------- #
def _focal_from_ce(ce, targets, gamma, ignore_index):
    """(1 - exp(-ce))**gamma * ce, with ignore_index rows zeroed."""
    # ce >= 0 mathematically; the clamp guards a few-ULP-negative value that
    # would make pt > 1 and (1 - pt) ** gamma NaN for non-integer gamma.
    ce = jnp.maximum(ce, 0.0)
    ce = jnp.where(targets != ignore_index, ce, 0.0)
    pt = jnp.exp(-ce)                              # (TN,1): lane-sparse EUP exp
    d = jnp.maximum(1.0 - pt, 0.0)
    g = float(gamma)
    if g == 2.0:                                   # common case: one VPU multiply
        mod = d * d
    elif g == float(int(g)) and 0.0 <= g <= 8.0:   # small integer gamma
        mod = jnp.ones_like(d)
        for _ in range(int(g)):
            mod = mod * d
    else:                                          # general gamma
        # Guard the d == 0 base (ignored rows / pt == 1): pow may lower to
        # exp(g*log(d)); the select keeps the mathematically-correct 0.
        mod = jnp.where(d > 0.0, d ** g, 0.0)
    return mod * ce


# --------------------------------------------------------------------------- #
# Kernel 1: class axis fits in a single block
# --------------------------------------------------------------------------- #
def _focal_kernel_single(logits_ref, targets_ref, out_ref, *, gamma,
                         ignore_index, n_total):
    logits = logits_ref[...]                       # (TN, C) caller dtype (f32/bf16)
    targets = targets_ref[...]                     # (TN, 1) int32
    tn, c = logits.shape

    # Row max and picked logit are exact in the raw dtype (a max and a single
    # select); only the (TN,1) results are upcast.  The lone (TN,C) f32 value
    # is the fused operand of the subtract+exp below (keeps vreg/VMEM pressure
    # low so TN can be large).
    row_max = jnp.max(logits, axis=-1, keepdims=True).astype(jnp.float32)
    col_ids = jax.lax.broadcasted_iota(jnp.int32, (tn, c), 1)
    picked = jnp.sum(jnp.where(col_ids == targets, logits, jnp.zeros_like(logits)),
                     axis=-1, keepdims=True).astype(jnp.float32)
    sumexp = jnp.sum(jnp.exp(logits.astype(jnp.float32) - row_max),
                     axis=-1, keepdims=True)

    ce = jnp.log(sumexp) + row_max - picked        # cross entropy per row
    focal = _focal_from_ce(ce, targets, gamma, ignore_index)

    # Mask padded rows of a ragged last tile LAST (drops NaN read from padding).
    if n_total % tn != 0:
        row_ids = (pl.program_id(0) * tn
                   + jax.lax.broadcasted_iota(jnp.int32, (tn, 1), 0))
        focal = jnp.where(row_ids < n_total, focal, 0.0)

    # Lane-dense partial-sum block; the tiny final mean happens in the wrapper.
    out_ref[...] = jnp.broadcast_to(jnp.sum(focal), out_ref.shape)


# --------------------------------------------------------------------------- #
# Kernel 2: class axis tiled (vocab-scale C), online logsumexp
# --------------------------------------------------------------------------- #
def _focal_kernel_ctiled(logits_ref, targets_ref, out_ref, m_scr, s_scr, p_scr,
                         *, gamma, ignore_index, n_total, c_total):
    j = pl.program_id(1)
    tn, tc = logits_ref.shape

    @pl.when(j == 0)
    def _():
        # Finite "-inf" keeps the online rescale exp(m_old - m_new) NaN-free.
        m_scr[...] = jnp.full_like(m_scr, -1e30)
        s_scr[...] = jnp.zeros_like(s_scr)
        p_scr[...] = jnp.zeros_like(p_scr)

    logits = logits_ref[...]                       # (TN, TC) caller dtype
    targets = targets_ref[...]                     # (TN, 1) int32 (resident across j)
    col_ids = (j * tc
               + jax.lax.broadcasted_iota(jnp.int32, (tn, tc), 1))

    # Picked-logit contribution: the target column lives in exactly one C tile,
    # so summing the per-tile single-element selects is exact.
    p_scr[...] += jnp.sum(
        jnp.where(col_ids == targets, logits, jnp.zeros_like(logits)),
        axis=-1, keepdims=True).astype(jnp.float32)

    # Online max-shifted logsumexp; mask the ragged last C tile's padding.
    x = logits.astype(jnp.float32)
    if c_total % tc != 0:
        x = jnp.where(col_ids < c_total, x, -jnp.inf)
    m_new = jnp.maximum(m_scr[...], jnp.max(x, axis=-1, keepdims=True))
    s_scr[...] = (s_scr[...] * jnp.exp(m_scr[...] - m_new)
                  + jnp.sum(jnp.exp(x - m_new), axis=-1, keepdims=True))
    m_scr[...] = m_new

    @pl.when(j == pl.num_programs(1) - 1)
    def _():
        ce = jnp.log(s_scr[...]) + m_scr[...] - p_scr[...]
        focal = _focal_from_ce(ce, targets, gamma, ignore_index)
        if n_total % tn != 0:
            row_ids = (pl.program_id(0) * tn
                       + jax.lax.broadcasted_iota(jnp.int32, (tn, 1), 0))
            focal = jnp.where(row_ids < n_total, focal, 0.0)
        out_ref[...] = jnp.broadcast_to(jnp.sum(focal), out_ref.shape)


# --------------------------------------------------------------------------- #
# Tile planning (generation-aware)
# --------------------------------------------------------------------------- #
def _tile_plan(n, c, dtype, block_rows=None, block_cols=None):
    """Pick (rows_per_tile, cols_per_tile, vmem_limit_bytes).

    cols_per_tile == c  -> single-block class axis (simple kernel)
    cols_per_tile <  c  -> class axis tiled (online-logsumexp kernel)
    """
    itemsize = jnp.dtype(dtype).itemsize
    try:
        vmem_cap = int(pltpu.get_tpu_info().vmem_capacity_bytes)
        if vmem_cap <= 0:
            raise ValueError("bad vmem capacity")
    except Exception:
        vmem_cap = 64 << 20                        # conservative (v7x-sized) fallback
    # v5e/v6e (128 MiB physical) -> 64 MiB scoped; v7x (64 MiB) -> ~44 MiB scoped.
    vmem_limit = int(min(64 << 20, (vmem_cap * 7) // 10))
    workspace = vmem_limit // 2                    # headroom for compiler scratch

    row_align = max(8, 32 // itemsize)             # f32: 8, bf16: 16, int8/fp8: 32
    c_pad = max(-(-c // 128) * 128, 128)           # lane padding

    def down(v, a):
        return max(a, (v // a) * a)

    def up(v, a):
        return -(-v // a) * a

    def rows_for(cols_pad, tiled_c):
        # Per-row VMEM: double-buffered logits block + ~2 live f32 temporaries
        # of the same (lane-padded) width + the (TN,1) int32 targets block
        # (512 B/row, x2 buffers) [+ three (TN,1) f32 online-LSE accumulators].
        per_row = 2 * cols_pad * itemsize + 2 * cols_pad * 4 + 2 * 512
        if tiled_c:
            per_row += 3 * 512
        return workspace // per_row

    # ---- column (class-axis) tile ----
    if block_cols is not None:
        tc = c if int(block_cols) >= c else max(128, (int(block_cols) // 128) * 128)
    elif rows_for(c_pad, False) >= min(n, 128):
        tc = c                                     # whole class axis fits comfortably
    else:
        # Vocab-scale C: tile the class axis, aiming for ~512-row tiles.
        tc = down(max(128, (workspace // 512) // (2 * (itemsize + 4))), 128)
        tc = min(tc, down(c_pad, 128))
    if tc >= c:
        tc = c

    # ---- row (batch-axis) tile ----
    tiled_c = tc < c
    cols_pad = up(tc, 128) if tiled_c else c_pad
    if block_rows is not None:
        tn = n if int(block_rows) >= n else down(int(block_rows), row_align)
    else:
        tn = down(rows_for(cols_pad, tiled_c), row_align)
        if tn >= n:
            tn = n
            # Keep >= 2 "parallel" grid steps on mid-size inputs so both v7x
            # TensorCores get work (neutral on single-TC v5e / v6e).
            if n >= 4 * row_align and n * c_pad * itemsize >= (1 << 20):
                split = up(-(-n // 2), row_align)
                if split < n:
                    tn = split
    return tn, tc, vmem_limit


# --------------------------------------------------------------------------- #
# Wrapper
# --------------------------------------------------------------------------- #
def focal_loss(logits, targets, *, gamma=2.0, ignore_index=-100,
               reduction="mean", block_rows=None, block_cols=None):
    """logits: (N, C) float (f32/bf16); targets: (N,) int.  Scalar focal loss."""
    # TODO(synk): class weights (weight != None) not implemented (module default).
    n, c = logits.shape
    targets2d = targets.reshape(n, 1).astype(jnp.int32)

    tn, tc, vmem_limit = _tile_plan(n, c, logits.dtype, block_rows, block_cols)
    grid_rows = pl.cdiv(n, tn)

    if tc >= c:
        # ---- single-block class axis ----
        kernel = functools.partial(
            _focal_kernel_single, gamma=float(gamma),
            ignore_index=int(ignore_index), n_total=n)
        partials = pl.pallas_call(
            kernel,
            out_shape=jax.ShapeDtypeStruct((grid_rows, 8, 128), jnp.float32),
            grid=(grid_rows,),
            in_specs=[
                pl.BlockSpec((tn, c), lambda i: (i, 0)),    # logits, caller dtype
                pl.BlockSpec((tn, 1), lambda i: (i, 0)),    # targets column
            ],
            out_specs=pl.BlockSpec((1, 8, 128), lambda i: (i, 0, 0)),
            compiler_params=pltpu.CompilerParams(
                dimension_semantics=("parallel",),
                vmem_limit_bytes=vmem_limit),
        )(logits, targets2d)
    else:
        # ---- class axis tiled: online logsumexp across the C grid axis ----
        grid_cols = pl.cdiv(c, tc)
        kernel = functools.partial(
            _focal_kernel_ctiled, gamma=float(gamma),
            ignore_index=int(ignore_index), n_total=n, c_total=c)
        partials = pl.pallas_call(
            kernel,
            out_shape=jax.ShapeDtypeStruct((grid_rows, 8, 128), jnp.float32),
            grid=(grid_rows, grid_cols),
            in_specs=[
                pl.BlockSpec((tn, tc), lambda i, j: (i, j)),  # logits tile
                pl.BlockSpec((tn, 1), lambda i, j: (i, 0)),   # targets (resident)
            ],
            out_specs=pl.BlockSpec((1, 8, 128), lambda i, j: (i, 0, 0)),
            scratch_shapes=[pltpu.VMEM((tn, 1), jnp.float32)] * 3,  # m, s, picked
            compiler_params=pltpu.CompilerParams(
                dimension_semantics=("parallel", "arbitrary"),
                vmem_limit_bytes=vmem_limit),
        )(logits, targets2d)

    total = jnp.sum(partials[:, 0, 0])
    if reduction == "mean":
        # Matches `.mean()` over all N rows (ignored rows included), exactly as
        # the PyTorch module (reduction='none' CE followed by loss.mean()).
        return total / jnp.float32(n)
    if reduction == "sum":
        return total
    # TODO(synk): reduction='none' needs a per-row output spec; not implemented.
    raise NotImplementedError("only reduction='mean'/'sum' implemented")


# --------------------------------------------------------------------------- #
# Pure-JAX reference + self-test
# --------------------------------------------------------------------------- #
def _reference_focal_loss(logits, targets, gamma=2.0, ignore_index=-100):
    logp = jax.nn.log_softmax(logits.astype(jnp.float32), axis=-1)
    safe_t = jnp.clip(targets, 0, logits.shape[1] - 1)
    picked = jnp.take_along_axis(logp, safe_t[:, None], axis=1)[:, 0]
    ce = jnp.where(targets == ignore_index, 0.0, -picked)
    pt = jnp.exp(-ce)
    return jnp.mean((1.0 - pt) ** gamma * ce)


if __name__ == "__main__":
    key = jax.random.PRNGKey(0)
    k1, k2, k3, k4, k5, k6 = jax.random.split(key, 6)

    # 1) Small single-tile case (8 samples, 32 classes) exercising ignore_index.
    n1, c1 = 8, 32
    logits1 = jax.random.normal(k1, (n1, c1), dtype=jnp.float32)
    targets1 = jax.random.randint(k2, (n1,), 0, c1, dtype=jnp.int32)
    targets1 = targets1.at[3].set(-100)
    out1 = jax.block_until_ready(focal_loss(logits1, targets1, gamma=2.0))
    ref1 = _reference_focal_loss(logits1, targets1, gamma=2.0)
    assert jnp.allclose(out1, ref1, atol=1e-5, rtol=1e-5), (out1, ref1)

    # 2) Multi-row-tile case with a ragged last tile and non-integer gamma.
    n2, c2 = 300, 32
    logits2 = jax.random.normal(k3, (n2, c2), dtype=jnp.float32)
    targets2 = jax.random.randint(k4, (n2,), 0, c2, dtype=jnp.int32)
    targets2 = targets2.at[17].set(-100)
    out2 = jax.block_until_ready(
        focal_loss(logits2, targets2, gamma=1.5, block_rows=128))
    ref2 = _reference_focal_loss(logits2, targets2, gamma=1.5)
    assert jnp.allclose(out2, ref2, atol=1e-5, rtol=1e-5), (out2, ref2)

    # 3) Class-tiled (online-logsumexp) path: bf16 logits, ragged last C tile,
    #    2x2 grid (row-parallel x class-reduction axes both exercised).
    n3, c3 = 64, 200
    logits3 = jax.random.normal(k5, (n3, c3), dtype=jnp.bfloat16)
    targets3 = jax.random.randint(k6, (n3,), 0, c3, dtype=jnp.int32)
    targets3 = targets3.at[5].set(-100)
    out3 = jax.block_until_ready(
        focal_loss(logits3, targets3, gamma=2.0, block_rows=32, block_cols=128))
    ref3 = _reference_focal_loss(logits3, targets3, gamma=2.0)
    assert jnp.allclose(out3, ref3, atol=1e-4, rtol=1e-4), (out3, ref3)

    print("KERNEL_OK")
</pallas_src>

<mosaic_0001>
module attributes {stable_mosaic.version = 11 : i64} {
  func.func @_focal_kernel_single(%arg0: i32, %arg1: memref<8x32xf32, #tpu.memory_space<vmem>>, %arg2: memref<8x1xi32, #tpu.memory_space<vmem>>, %arg3: memref<1x8x128xf32, #tpu.memory_space<vmem>>) attributes {dimension_semantics = [#tpu.dimension_semantics<parallel>], iteration_bounds = array<i64: 1>, scalar_prefetch = 0 : i64, scratch_operands = 0 : i64, tpu.core_type = #tpu.core_type<tc>, window_params = [{transform_indices = @transform_0, window_bounds = array<i64: 8, 32>}, {transform_indices = @transform_1, window_bounds = array<i64: 8, 1>}, {transform_indices = @transform_2, window_bounds = array<i64: 1, 8, 128>}]} {
    %c0 = arith.constant 0 : index
    %c0_0 = arith.constant 0 : index
    %0 = vector.load %arg1[%c0, %c0_0] : memref<8x32xf32, #tpu.memory_space<vmem>>, vector<8x32xf32>
    %c0_1 = arith.constant 0 : index
    %c0_2 = arith.constant 0 : index
    %1 = vector.load %arg2[%c0_1, %c0_2] : memref<8x1xi32, #tpu.memory_space<vmem>>, vector<8x1xi32>
    %cst = arith.constant dense<0xFF800000> : vector<8xf32>
    %2 = vector.multi_reduction <maximumf>, %0, %cst [1] : vector<8x32xf32> to vector<8xf32>
    %3 = vector.shape_cast %2 : vector<8xf32> to vector<8x1xf32>
    %4 = tpu.iota {dimensions = array<i32: 1>} : vector<8x32xi32>
    %5 = vector.broadcast %1 : vector<8x1xi32> to vector<8x32xi32>
    %6 = arith.cmpi eq, %4, %5 : vector<8x32xi32>
    %cst_3 = arith.constant 0.000000e+00 : f32
    %7 = vector.broadcast %cst_3 : f32 to vector<8x32xf32>
    %8 = arith.select %6, %0, %7 : vector<8x32xi1>, vector<8x32xf32>
    %cst_4 = arith.constant dense<0.000000e+00> : vector<8xf32>
    %9 = vector.multi_reduction <add>, %8, %cst_4 [1] : vector<8x32xf32> to vector<8xf32>
    %10 = vector.shape_cast %9 : vector<8xf32> to vector<8x1xf32>
    %11 = vector.broadcast %3 : vector<8x1xf32> to vector<8x32xf32>
    %12 = arith.subf %0, %11 : vector<8x32xf32>
    %13 = math.exp %12 : vector<8x32xf32>
    %cst_5 = arith.constant dense<0.000000e+00> : vector<8xf32>
    %14 = vector.multi_reduction <add>, %13, %cst_5 [1] : vector<8x32xf32> to vector<8xf32>
    %15 = vector.shape_cast %14 : vector<8xf32> to vector<8x1xf32>
    %16 = math.log %15 : vector<8x1xf32>
    %17 = arith.addf %16, %3 : vector<8x1xf32>
    %18 = arith.subf %17, %10 : vector<8x1xf32>
    %cst_6 = arith.constant 0.000000e+00 : f32
    %19 = vector.broadcast %cst_6 : f32 to vector<8x1xf32>
    %20 = arith.maximumf %18, %19 : vector<8x1xf32>
    %c-100_i32 = arith.constant -100 : i32
    %21 = vector.broadcast %c-100_i32 : i32 to vector<8x1xi32>
    %22 = arith.cmpi ne, %1, %21 : vector<8x1xi32>
    %cst_7 = arith.constant 0.000000e+00 : f32
    %23 = vector.broadcast %cst_7 : f32 to vector<8x1xf32>
    %24 = arith.select %22, %20, %23 : vector<8x1xi1>, vector<8x1xf32>
    %cst_8 = arith.constant 0.000000e+00 : f32
    %25 = vector.broadcast %cst_8 : f32 to vector<8x1xf32>
    %26 = arith.subf %25, %24 : vector<8x1xf32>
    %27 = math.exp %26 : vector<8x1xf32>
    %cst_9 = arith.constant 1.000000e+00 : f32
    %28 = vector.broadcast %cst_9 : f32 to vector<8x1xf32>
    %29 = arith.subf %28, %27 : vector<8x1xf32>
    %cst_10 = arith.constant 0.000000e+00 : f32
    %30 = vector.broadcast %cst_10 : f32 to vector<8x1xf32>
    %31 = arith.maximumf %29, %30 : vector<8x1xf32>
    %32 = arith.mulf %31, %31 : vector<8x1xf32>
    %33 = arith.mulf %32, %24 : vector<8x1xf32>
    %34 = vector.shape_cast %33 : vector<8x1xf32> to vector<1x8x1xf32>
    %cst_11 = arith.constant dense<0.000000e+00> : vector<1xf32>
    %35 = vector.multi_reduction <add>, %34, %cst_11 [1, 2] : vector<1x8x1xf32> to vector<1xf32>
    %36 = vector.shape_cast %35 : vector<1xf32> to vector<1x1x1xf32>
    %37 = vector.extract %36[0, 0, 0] : f32 from vector<1x1x1xf32>
    %38 = vector.broadcast %37 : f32 to vector<1x8x128xf32>
    %c0_12 = arith.constant 0 : index
    %c0_13 = arith.constant 0 : index
    %c0_14 = arith.constant 0 : index
    %39 = vector.load %arg3[%c0_12, %c0_13, %c0_14] : memref<1x8x128xf32, #tpu.memory_space<vmem>>, vector<1x8x128xf32>
    tpu.vector_store %arg3[%c0_12, %c0_13, %c0_14], %38 {strides = array<i32>} : memref<1x8x128xf32, #tpu.memory_space<vmem>>, vector<1x8x128xf32>,
    return
  }
  func.func @transform_0(%arg0: i32) -> (i32, i32) {
    %c0_i32 = arith.constant 0 : i32
    %c0_i32_0 = arith.constant 0 : i32
    return %arg0, %c0_i32 : i32, i32
  }
  func.func @transform_1(%arg0: i32) -> (i32, i32) {
    %c0_i32 = arith.constant 0 : i32
    %c0_i32_0 = arith.constant 0 : i32
    return %arg0, %c0_i32 : i32, i32
  }
  func.func @transform_2(%arg0: i32) -> (i32, i32, i32) {
    %c0_i32 = arith.constant 0 : i32
    %c0_i32_0 = arith.constant 0 : i32
    %c0_i32_1 = arith.constant 0 : i32
    return %arg0, %c0_i32, %c0_i32_0 : i32, i32, i32
  }
}

</mosaic_0001>

<bundles_post_ra>
// kernel: tpu_custom_call.1
= control target key start
LH: loop header
LB: loop body
LE: loop exit
PB: predicated region body
PF: predicated region fallthrough
CT: control target
= control target key end

     0   :  { %vm14_vm0 = vcmask 261120   ;;  %s148_s0 = inlined_call_operand.vmem [shape: f32[8,32], index: 0, kind: input, shape index: {}]   ;;  %s149_s1 = inlined_call_operand.vmem [shape: s32[8,1], index: 1, kind: input, shape index: {}]   ;;  %s150_s2 = inlined_call_operand.hbm [shape: f32[1,8,128], index: 2, kind: output, shape index: {}]  }
   0x1   :  { %v12_v0 = vld [vmem:[%s148_s0] sm:$0xff] }
   0x2   :  { %7 = vsyncpa [#allocation3], 0  ;;  %v15_v1 = vsel %vm14_vm0, %v12_v0, -inf  ;;  %v110_v2 = vmov 0   ;;  %v13_v3 = vld [vmem:[%s149_s1] sm:$0xff]  ;;  %v18_v7 = vlaneseq  ;;  %vm48_vm3 = vcmask 7168  }
   0x3   :  { %79 = vset.pattern.permute.xlu0 %v110_v2  ;;  %vm39_vm2 = vcmp.ne.s32.totalorder %v13_v3, 4294967196  ;;  %s111_s0 = smov [#allocation2]  }
   0x4   :  { %16 = vmax.xlane.f32.xlu0 %v15_v1  ;;  %v19_v8 = vand.u32 127, %v18_v7  ;;  %s67_s1 = sshll.u32 %s111_s0, 4  ;;  %s68_s1 = int_to_ptr.vmem [resolvable:$true] %s67_s1 }
   0x5   :  { %s86_s14 = scalar_lea.vmem %s68_s1, 128  ;;  %p91_p1 = scmp.lt.s32.totalorder %s68_s1, %s68_s1 }
   0x6   :  { %p87_p0 = scmp.ne.s32.totalorder %s68_s1, %s86_s14  ;;  %p92_p2 = scmp.lt.s32.totalorder %s86_s14, %s86_s14 }
   0x8   :  { %p93_p3 = por %p92_p2, %p91_p1 }
   0xa   :  { %p94_p4 = pnand %p93_p3, %p87_p0 }
  0x1a   :  { %21 = vperm.xlu0 %79, %v13_v3  }
  0x91   :  { %v17_v4 = vpop.xlane.xlu0 %16 }
  0x92   :  { %v28_v5 = vsub.f32 %v12_v0, %v17_v4 }
  0x94   :  { %v29_v6 = vmul.f32 1.442695, %v28_v5 }
  0x96   :  { %80 = vpow2.f32 %v29_v6 }
  0x99   :  { %v22_v9 = vpop.permute.xlu0 %21 }
  0x9a   :  { %vm23_vm1 = vcmp.eq.s32.totalorder %v19_v8, %v22_v9 }
  0x9b   :  { %v24_v11 = vsel %vm23_vm1, %v12_v0, 0.0 }
  0x9c   :  { %v25_v13 = vsel %vm14_vm0, %v24_v11, 0.0 }
  0xa0   :  { %v81_v10 = vpop.eup %80 }
  0xa1   :  { %v31_v12 = vsel %vm14_vm0, %v81_v10, 0.0 }
  0xa2   :  { %32 = vadd.xlane.f32.xlu1 %v31_v12 }
  0xa6   :  { %26 = vadd.xlane.f32.xlu1 %v25_v13 }
 0x12f   :  { %v33_v14 = vpop.xlane.xlu1 %32 }
 0x130   :  { %82 = vlog2.f32 %v33_v14 }
 0x133   :  { %v27_v17 = vpop.xlane.xlu1 %26 }
 0x13a   :  { %v83_v15 = vpop.eup %82 }
 0x13b   :  { %v35_v16 = vmul.f32 0.6931472, %v83_v15 }
 0x13d   :  { %v36_v18 = vadd.f32 %v35_v16, %v17_v4 }
 0x13f   :  { %v37_v19 = vsub.f32 %v36_v18, %v27_v17 }
 0x141   :  { %v38_v20 = vmax.f32 %v37_v19, 0.0 }
 0x143   :  { %v40_v21 = vsel %vm39_vm2, %v38_v20, 0.0 }
 0x144   :  { %v41_v22 = vsub.f32 0.0, %v40_v21 }
 0x146   :  { %v42_v23 = vmul.f32 1.442695, %v41_v22 }
 0x148   :  { %84 = vpow2.f32 %v42_v23 }
 0x152   :  { %v85_v24 = vpop.eup %84 }
 0x153   :  { %v44_v25 = vsub.f32 1.0, %v85_v24 }
 0x155   :  { %v45_v26 = vmax.f32 %v44_v25, 0.0 }
 0x157   :  { %v46_v27 = vmul.f32 %v45_v26, %v45_v26 }
 0x159   :  { %v47_v28 = vmul.f32 %v46_v27, %v40_v21 }
 0x15b   :  { %v49_v29 = vsel %vm48_vm3, %v47_v28, 0.0 }
 0x15c   :  { %50 = vadd.xlane.f32.xlu1 %v49_v29 }
 0x1e9   :  { %v51_v30 = vpop.xlane.xlu1 %50 }
 0x1ea   :  { %v52_v31 = vrot.slane %v51_v30, 4 }
 0x1ec   :  { %v53_v32 = vadd.f32 %v52_v31, %v51_v30 }
 0x1ee   :  { %v54_v33 = vrot.slane %v53_v32, 2 }
 0x1f0   :  { %v55_v34 = vadd.f32 %v54_v33, %v53_v32 }
 0x1f2   :  { %v56_v35 = vrot.slane %v55_v34, 1 }
 0x1f4   :  { %v57_v36 = vadd.f32 %v56_v35, %v55_v34 }
 0x1f6   :  { %75 = vpush %v57_v36 }
 0x227   :  { %s76_s13 = spop %75 }
 0x228   :  { %v59_v37 = vstv %s76_s13 }
 0x229   :  { %60 = vst [vmem:[#allocation2] sm:$0xff] %v59_v37 }
 0x22a   :  { %97 = shalt.err (!%p94_p4)
}
 0x22b   :  { %s98_s17 = scalar_lea.hbm %s150_s2, 128 }
 0x22c   :  { %p99_p5 = scmp.ne.s32.totalorder %s150_s2, %s98_s17  ;;  %p102_p6 = scmp.lt.u32.totalorder %s98_s17, %s150_s2 }
 0x22e   :  { %p104_p7 = pnand %p102_p6, %p99_p5 }
 0x230   :  { %107 = shalt.err (!%p104_p7)
}
 0x231   :  { %70 = dma.vmem_to_hbm [thread:$0]  %s68_s1, 128, %s150_s2, [#allocation3]  }
 0x232   :  { %108 = dma.done.wait [#allocation3], 128  }
 0x233   :  { %109 = vsyncadd [#allocation3], 4294967168 }
 0x234   :  { %74 = vsyncpa [#allocation3], 1 }

</bundles_post_ra>
